<compile_context>
chip_gen: v6e
topology: v6e:2x2x1
jax: 0.10.0
libtpu: 0.0.40
codegen_flags: <defaults>
</compile_context>

<pallas_src>
import jax
import jax.numpy as jnp
from jax.experimental import pallas as pl
from jax.experimental.pallas import tpu as pltpu

HID = 10  # hidden width of fc1 / fc2


def _mlp_kernel(x_ref, wp_ref, o_ref):
    # Lane-dense, transposed layout: batch on the lane (last) axis.
    x = x_ref[...]                                # (2, bt) f32

    # Packed resident parameter block (11, 16):
    w2 = wp_ref[0:HID, 0:HID]                     # (10, 10)
    b1 = wp_ref[0:HID, HID:HID + 1]               # (10, 1)
    b2 = wp_ref[0:HID, HID + 1:HID + 2]           # (10, 1)
    w1 = wp_ref[0:HID, HID + 2:HID + 4]           # (10, 2)
    w3 = wp_ref[HID:HID + 1, 0:HID]               # (1, 10)
    b3 = wp_ref[HID:HID + 1, HID:HID + 1]         # (1, 1)

    # ---- fc1 + ReLU: MXU matmul, f32 accumulate; bias+ReLU on the VPU ----
    h1 = jnp.maximum(
        jnp.dot(w1, x, preferred_element_type=jnp.float32) + b1, 0.0)   # (10, bt)

    # ---- fc2 + ReLU ----
    h2 = jnp.maximum(
        jnp.dot(w2, h1, preferred_element_type=jnp.float32) + b2, 0.0)  # (10, bt)

    # ---- fc3 + sigmoid (exact): exp on the EUP, plain divide (VPU has slack) ----
    z = jnp.dot(w3, h2, preferred_element_type=jnp.float32) + b3        # (1, bt)
    o_ref[...] = 1.0 / (1.0 + jnp.exp(-z))


def _round_up(n, m):
    return (n + m - 1) // m * m


def _pack_params(params):
    """Pack the six nn.Linear tensors into one (HID+1, 16) f32 block:
         rows 0..9 : [ W2 (10x10) | b1 | b2 | W1 (10x2) | pad ]
         row  10   : [ W3 (1x10)  | b3 | pad            ]
    One resident DMA instead of seven tiny ones."""
    w1 = jnp.asarray(params["w1"], jnp.float32).reshape(HID, 2)
    w2 = jnp.asarray(params["w2"], jnp.float32).reshape(HID, HID)
    w3 = jnp.asarray(params["w3"], jnp.float32).reshape(1, HID)
    b1 = jnp.asarray(params["b1"], jnp.float32).reshape(HID, 1)
    b2 = jnp.asarray(params["b2"], jnp.float32).reshape(HID, 1)
    b3 = jnp.asarray(params["b3"], jnp.float32).reshape(1, 1)

    wp = jnp.zeros((HID + 1, 16), jnp.float32)
    wp = wp.at[0:HID, 0:HID].set(w2)
    wp = wp.at[0:HID, HID:HID + 1].set(b1)
    wp = wp.at[0:HID, HID + 1:HID + 2].set(b2)
    wp = wp.at[0:HID, HID + 2:HID + 4].set(w1)
    wp = wp.at[HID:HID + 1, 0:HID].set(w3)
    wp = wp.at[HID:HID + 1, HID:HID + 1].set(b3)
    return wp


def simple_nn_forward_t(xt, params, *, block_b=32768, vmem_limit_bytes=40 << 20):
    """Core entry point (no wrapper copies).
    xt: (2, B) float32 — x already transposed so the batch lives on the lane axis.
    Returns sigmoid(fc3(relu(fc2(relu(fc1(x)))))) with shape (B, 1)."""
    assert xt.ndim == 2 and xt.shape[0] == 2, "expected x transposed to (2, B)"
    B = xt.shape[1]
    wp = _pack_params(params)

    # Batch tile: large (default 32768 -> 256 KB streamed x per step) so the
    # ~0.35 us per-grid-step overhead is amortized; multiple of 128 lanes unless
    # the whole batch fits in one block.  Ragged tails are handled by Pallas'
    # partial last block (masked output stores), not by padding the batch.
    bt = _round_up(max(1, min(block_b, B)), 128)
    if bt >= B:
        bt = B
    grid = (pl.cdiv(B, bt),)

    out_t = pl.pallas_call(
        _mlp_kernel,
        out_shape=jax.ShapeDtypeStruct((1, B), jnp.float32),
        grid=grid,
        in_specs=[
            pl.BlockSpec((2, bt), lambda i: (0, i)),         # streamed x tile (lane-dense batch)
            pl.BlockSpec((HID + 1, 16), lambda i: (0, 0)),   # packed params, VMEM-resident
        ],
        out_specs=pl.BlockSpec((1, bt), lambda i: (0, i)),   # lane-dense output store
        compiler_params=pltpu.CompilerParams(
            # Batch tiles are independent -> shard across v7x's two TensorCores;
            # harmless on single-TC v5e/v6e.
            dimension_semantics=("parallel",),
            # Explicit limit so big tiles compile on v5e (16 MiB default scoped
            # VMEM) and stay under v7x's 64 MiB physical with headroom.
            vmem_limit_bytes=vmem_limit_bytes,
        ),
    )(xt, wp)

    return out_t.T    # (1, B) -> (B, 1): effectively a reshape, essentially free


def simple_nn_forward(x, params, **kwargs):
    """PyTorch-layout convenience wrapper: x (B, 2) -> (B, 1).
    Note: x.T costs one extra HBM read+write of x; produce (2, B) upstream and
    call simple_nn_forward_t directly when the forward is HBM-bound."""
    return simple_nn_forward_t(x.T, params, **kwargs)


def init_params(key):
    """Deterministic init mimicking nn.Linear's U(-1/sqrt(fan_in), +1/sqrt(fan_in)),
    stored in PyTorch (out, in) layout with (out,) biases."""
    def linear(key, fan_in, fan_out):
        kw, kb = jax.random.split(key)
        bound = float(fan_in) ** -0.5
        w = jax.random.uniform(kw, (fan_out, fan_in), jnp.float32, -bound, bound)
        b = jax.random.uniform(kb, (fan_out,), jnp.float32, -bound, bound)
        return w, b

    k1, k2, k3 = jax.random.split(key, 3)
    w1, b1 = linear(k1, 2, HID)
    w2, b2 = linear(k2, HID, HID)
    w3, b3 = linear(k3, HID, 1)
    return {"w1": w1, "b1": b1, "w2": w2, "b2": b2, "w3": w3, "b3": b3}


def _reference_forward(x, p):
    h1 = jnp.maximum(x @ p["w1"].T + p["b1"], 0.0)
    h2 = jnp.maximum(h1 @ p["w2"].T + p["b2"], 0.0)
    return jax.nn.sigmoid(h2 @ p["w3"].T + p["b3"])


if __name__ == "__main__":
    key = jax.random.PRNGKey(0)
    kx, kp = jax.random.split(key)

    # Small batch of 2-D "two moons"-like points.  Produce x already transposed
    # (2, B) — the copy-free production path the kernel is designed for.
    B = 300
    xt = jax.random.normal(kx, (2, B), jnp.float32)
    x = xt.T                                  # (B, 2), for the reference / wrapper
    params = init_params(kp)

    # Small tile -> 3 grid steps including a ragged 44-column tail
    # (exercises the partial-last-block path).
    out = simple_nn_forward_t(xt, params, block_b=128)
    out = jax.block_until_ready(out)

    ref = _reference_forward(x, params)
    assert out.shape == (B, 1)
    # Typical agreement is ~1e-6 now that the sigmoid uses an exact divide; the
    # loose bound only covers f32-matmul rounding-mode differences between the
    # MXU path and XLA's reference dot.
    max_err = float(jnp.max(jnp.abs(out - ref)))
    assert jnp.allclose(out, ref, atol=2e-3, rtol=2e-3), (
        f"mismatch vs reference: max abs err {max_err}")

    # PyTorch-layout (B, 2) wrapper at the default (large) tile: single block.
    out2 = jax.block_until_ready(simple_nn_forward(x, params))
    assert out2.shape == (B, 1)
    assert jnp.allclose(out2, ref, atol=2e-3, rtol=2e-3)

    print("KERNEL_OK")
</pallas_src>

<mosaic_0001>
module attributes {stable_mosaic.version = 11 : i64} {
  func.func @_mlp_kernel(%arg0: i32, %arg1: memref<2x128xf32, #tpu.memory_space<vmem>>, %arg2: memref<11x16xf32, #tpu.memory_space<vmem>>, %arg3: memref<1x128xf32, #tpu.memory_space<vmem>>) attributes {dimension_semantics = [#tpu.dimension_semantics<parallel>], iteration_bounds = array<i64: 3>, scalar_prefetch = 0 : i64, scratch_operands = 0 : i64, tpu.core_type = #tpu.core_type<tc>, window_params = [{transform_indices = @transform_0, window_bounds = array<i64: 2, 128>}, {pipeline_mode = #tpu.pipeline_mode<synchronous>, transform_indices = @transform_1, window_bounds = array<i64: 11, 16>}, {transform_indices = @transform_2, window_bounds = array<i64: 1, 128>}]} {
    %c0 = arith.constant 0 : index
    %c0_0 = arith.constant 0 : index
    %0 = vector.load %arg1[%c0, %c0_0] : memref<2x128xf32, #tpu.memory_space<vmem>>, vector<2x128xf32>
    %c0_1 = arith.constant 0 : index
    %c0_2 = arith.constant 0 : index
    %1 = vector.load %arg2[%c0_1, %c0_2] : memref<11x16xf32, #tpu.memory_space<vmem>>, vector<10x10xf32>
    %c0_3 = arith.constant 0 : index
    %c10 = arith.constant 10 : index
    %2 = vector.load %arg2[%c0_3, %c10] : memref<11x16xf32, #tpu.memory_space<vmem>>, vector<10x1xf32>
    %c0_4 = arith.constant 0 : index
    %c11 = arith.constant 11 : index
    %3 = vector.load %arg2[%c0_4, %c11] : memref<11x16xf32, #tpu.memory_space<vmem>>, vector<10x1xf32>
    %c0_5 = arith.constant 0 : index
    %c12 = arith.constant 12 : index
    %4 = vector.load %arg2[%c0_5, %c12] : memref<11x16xf32, #tpu.memory_space<vmem>>, vector<10x2xf32>
    %c10_6 = arith.constant 10 : index
    %c0_7 = arith.constant 0 : index
    %5 = vector.load %arg2[%c10_6, %c0_7] : memref<11x16xf32, #tpu.memory_space<vmem>>, vector<1x10xf32>
    %c10_8 = arith.constant 10 : index
    %c10_9 = arith.constant 10 : index
    %6 = vector.load %arg2[%c10_8, %c10_9] : memref<11x16xf32, #tpu.memory_space<vmem>>, vector<1x1xf32>
    %cst = arith.constant dense<0.000000e+00> : vector<10x128xf32>
    %7 = tpu.matmul %4, %0, %cst {dimension_numbers = #tpu.dot_dimension_numbers<[1], [0], [0], [1], [0, 0, 1, 1], [], []>} : vector<10x2xf32>, vector<2x128xf32>, vector<10x128xf32> -> vector<10x128xf32>
    %8 = vector.broadcast %2 : vector<10x1xf32> to vector<10x128xf32>
    %9 = arith.addf %7, %8 : vector<10x128xf32>
    %cst_10 = arith.constant 0.000000e+00 : f32
    %10 = vector.broadcast %cst_10 : f32 to vector<10x128xf32>
    %11 = arith.maximumf %9, %10 : vector<10x128xf32>
    %cst_11 = arith.constant dense<0.000000e+00> : vector<10x128xf32>
    %12 = tpu.matmul %1, %11, %cst_11 {dimension_numbers = #tpu.dot_dimension_numbers<[1], [0], [0], [1], [0, 0, 1, 1], [], []>} : vector<10x10xf32>, vector<10x128xf32>, vector<10x128xf32> -> vector<10x128xf32>
    %13 = vector.broadcast %3 : vector<10x1xf32> to vector<10x128xf32>
    %14 = arith.addf %12, %13 : vector<10x128xf32>
    %cst_12 = arith.constant 0.000000e+00 : f32
    %15 = vector.broadcast %cst_12 : f32 to vector<10x128xf32>
    %16 = arith.maximumf %14, %15 : vector<10x128xf32>
    %cst_13 = arith.constant dense<0.000000e+00> : vector<1x128xf32>
    %17 = tpu.matmul %5, %16, %cst_13 {dimension_numbers = #tpu.dot_dimension_numbers<[1], [0], [0], [1], [0, 0, 1, 1], [], []>} : vector<1x10xf32>, vector<10x128xf32>, vector<1x128xf32> -> vector<1x128xf32>
    %18 = vector.broadcast %6 : vector<1x1xf32> to vector<1x128xf32>
    %19 = arith.addf %17, %18 : vector<1x128xf32>
    %cst_14 = arith.constant 0.000000e+00 : f32
    %20 = vector.broadcast %cst_14 : f32 to vector<1x128xf32>
    %21 = arith.subf %20, %19 : vector<1x128xf32>
    %22 = math.exp %21 : vector<1x128xf32>
    %cst_15 = arith.constant 1.000000e+00 : f32
    %23 = vector.broadcast %cst_15 : f32 to vector<1x128xf32>
    %24 = arith.addf %23, %22 : vector<1x128xf32>
    %cst_16 = arith.constant 1.000000e+00 : f32
    %25 = vector.broadcast %cst_16 : f32 to vector<1x128xf32>
    %26 = arith.divf %25, %24 : vector<1x128xf32>
    %c0_17 = arith.constant 0 : index
    %c0_18 = arith.constant 0 : index
    %27 = vector.load %arg3[%c0_17, %c0_18] : memref<1x128xf32, #tpu.memory_space<vmem>>, vector<1x128xf32>
    tpu.vector_store %arg3[%c0_17, %c0_18], %26 {strides = array<i32>} : memref<1x128xf32, #tpu.memory_space<vmem>>, vector<1x128xf32>,
    return
  }
  func.func @transform_0(%arg0: i32) -> (i32, i32) {
    %c0_i32 = arith.constant 0 : i32
    %c0_i32_0 = arith.constant 0 : i32
    return %c0_i32, %arg0 : i32, i32
  }
  func.func @transform_1(%arg0: i32) -> (i32, i32) {
    %c0_i32 = arith.constant 0 : i32
    %c0_i32_0 = arith.constant 0 : i32
    %c0_i32_1 = arith.constant 0 : i32
    return %c0_i32, %c0_i32_0 : i32, i32
  }
  func.func @transform_2(%arg0: i32) -> (i32, i32) {
    %c0_i32 = arith.constant 0 : i32
    %c0_i32_0 = arith.constant 0 : i32
    return %c0_i32, %arg0 : i32, i32
  }
}

</mosaic_0001>

<bundles_post_ra>
// kernel: tpu_custom_call.1
= control target key start
LH: loop header
LB: loop body
LE: loop exit
PB: predicated region body
PF: predicated region fallthrough
CT: control target
= control target key end

     0   :  { %7 = vsyncpa [#allocation3], 0  ;;  %s984_s0 = inlined_call_operand.hbm [shape: f32[2,300], index: 0, kind: input, shape index: {}]   ;;  %s985_s1 = inlined_call_operand.hbm [shape: f32[11,16], index: 1, kind: input, shape index: {}]   ;;  %s986_s2 = inlined_call_operand.hbm [shape: f32[1,300], index: 2, kind: output, shape index: {}]  }
   0x1   :  { %9 = vsyncpa [#allocation3 + $0x1], 0 }
   0x2   :  { %10 = vsyncpa [#allocation6], 0 }
   0x3   :  { %11 = vsyncpa [#allocation4], 0 }
   0x4   :  { %13 = vsyncpa [#allocation4 + $0x1], 0  ;;  %s817_s9 = smov 0   ;;  %s819_s10 = smov 0  }
   0x5   :  { %s821_s11 = smov 0   ;;  %s823_s12 = smov 0  }
   0x6 LB: > { %s838_s13 = sadd.s32 4294967295, %s790_s12   ;;  %s546_s14 = sadd.s32 4294967294, %s790_s12   ;;  %s790_s12 = sphi %s823_s12, %s1007_s12   ;;  %s786_s11 = sphi %s821_s11, %s1006_s11   ;;  %s782_s10 = sphi %s819_s10, %s1005_s10   ;;  %s778_s9 = sphi %s817_s9, %s1004_s9  }
   0x7   : > { %p39_p0 = scmp.ne.s32.totalorder %s782_s10, %s778_s9  ;;  %p987_p1 = scmp.eq.s32.totalorder %s838_s13, 0 }
   0x8   : > { %p90_p3 = scmp.eq.s32.totalorder %s546_s14, 2  ;;  %p547_p5 = scmp.ge.s32.totalorder %s790_s12, 1 }
   0x9   : > { %p847_p4 = por %p987_p1, %p39_p0  ;;  %p97_p7 = scmp.lt.s32.totalorder %s790_s12, 4 }
   0xa   : > { %p852_p6 = por %p90_p3, %p39_p0  ;;  %s792_s18 = smov [#allocation5]  }
   0xb   : > { %s991_s15 = scalar_select %p847_p4, 1, 0 }
   0xc   : > { %s992_s16 = scalar_select %p852_p6, 1, 0 }
   0xd   : > { %p857_p8 = pnand %p547_p5, %p97_p7  ;;  %s109_s19 = sshll.u32 %s792_s18, 4  ;;  %s110_s19 = int_to_ptr.vmem [resolvable:$true] %s109_s19 }
   0xe   : > { %s870_s21 = sadd.s32 1, %s790_s12   ;;  %s26_s22 = sadd.s32 1, %s786_s11 }
   0xf   : > { %s993_s17 = scalar_select %p857_p8, 1, 0 }
  0x10   : > { %p603_p9 = pneg %p857_p8  ;;  %s23_s23 = ssub.s32 %s790_s12, %s870_s21 }
  0x11   : > { %s679_s24 = scalar_lea.vmem %s110_s19, 256  ;;  %p687_p3 = scmp.lt.s32.totalorder %s110_s19, %s110_s19 }
  0x12   : > { %p865_p10 = pnand %p603_p9, %p987_p1  ;;  %p680_p12 = scmp.ne.s32.totalorder %s110_s19, %s679_s24 }
  0x13   : > { %p688_p5 = scmp.lt.s32.totalorder %s679_s24, %s679_s24 }
  0x14   : > { %p670_p11 = pneg %p865_p10 }
  0x15   : > { %p689_p7 = por %p688_p5, %p687_p3 }
  0x16   : > { %p682_p13 = pnand %p680_p12, %p670_p11 }
  0x18   : > { %p683_p0 = pneg %p682_p13 }
  0x1a   : > { %p690_p2 = pnand %p689_p7, %p683_p0 }
  0x1c   : > { %693 = shalt.err (!%p690_p2)
}
  0x1d   : > { %s793_s25 = smov 128   ;;  %s794_s26 = smov 8  }
  0x1e   : > { %606 = dma.hbm_to_vmem [thread:$0]  (!%p865_p10), %s985_s1, 256, %s110_s19, [#allocation6], %s793_s25, %s793_s25, %s794_s26  }
  0x1f   : > { %p24_p9 = scmp.eq.s32.totalorder %s23_s23, 0  ;;  %p33_p11 = scmp.ne.s32.totalorder %s786_s11, %s782_s10 }
  0x20   : > { %p34_p12 = scmp.eq.s32.totalorder %s790_s12, 0  ;;  %p616_p2 = scmp.lt.s32.totalorder %s790_s12, 3 }
  0x21   : > { %s887_s29 = scalar_select %p24_p9, %s786_s11, %s26_s22  }
  0x22   : > { %p35_p13 = por %p34_p12, %p33_p11  ;;  %p995_p0 = scmp.eq.s32.totalorder %s838_s13, 2 }
  0x23   : > { %s123_s3 = sand.u32 1, %s786_s11   ;;  %s551_s4 = sshll.u32 %s790_s12, 5 }
  0x24   : > { %p891_p3 = por %p995_p0, %p33_p11  ;;  %s550_s5 = sshll.u32 %s123_s3, 1 }
  0x25   : > { %s900_s8 = scalar_lea.hbm %s984_s0, %s551_s4  ;;  %s127_s14 = scalar_lea.vmem [#allocation2], %s550_s5 }
  0x26   : > { %s996_s30 = scalar_select %p891_p3, 1, 0 }
  0x27   : > { %s134_s18 = sshll.u32 %s127_s14, 4  ;;  %p902_p10 = pnand %p616_p2, %p35_p13  ;;  %s135_s18 = int_to_ptr.vmem [resolvable:$true] %s134_s18 }
  0x28   : > { %s124_s20 = scalar_lea.sflag [#allocation3], %s123_s3  ;;  %s694_s22 = scalar_lea.hbm %s900_s8, 32 }
  0x29   : > { %p695_p5 = scmp.ne.s32.totalorder %s900_s8, %s694_s22  ;;  %p696_p7 = pneg %p902_p10 }
  0x2a   : > { %s699_s25 = scalar_lea.hbm %s984_s0, 96  ;;  %p700_p12 = scmp.lt.s32.totalorder %s900_s8, %s984_s0 }
  0x2b   : > { %p697_p9 = pnand %p696_p7, %p695_p5  ;;  %p701_p2 = scmp.lt.s32.totalorder %s699_s25, %s694_s22 }
  0x2d   : > { %p698_p11 = pneg %p697_p9  ;;  %p702_p13 = por %p701_p2, %p700_p12 }
  0x2f   : > { %p703_p0 = pnand %p702_p13, %p698_p11 }
  0x31   : > { %706 = shalt.err (!%p703_p0)
}
  0x32   : > { %s707_s28 = scalar_lea.vmem %s135_s18, 32  ;;  %s795_s3 = smov [#allocation2]  }
  0x33   : > { %p708_p1 = scmp.ne.s32.totalorder %s135_s18, %s707_s28  ;;  %s712_s4 = sshll.u32 %s795_s3, 4  ;;  %s713_s4 = int_to_ptr.vmem [resolvable:$false] %s712_s4 }
  0x34   : > { %s714_s5 = scalar_lea.vmem %s713_s4, 64  ;;  %p715_p5 = scmp.lt.s32.totalorder %s135_s18, %s713_s4 }
  0x35   : > { %p710_p6 = pnand %p708_p1, %p696_p7  ;;  %p716_p9 = scmp.lt.s32.totalorder %s714_s5, %s707_s28 }
  0x37   : > { %p711_p3 = pneg %p710_p6  ;;  %p717_p4 = por %p716_p9, %p715_p5 }
  0x39   : > { %p718_p8 = pnand %p717_p4, %p711_p3 }
  0x3b   : > { %721 = shalt.err (!%p718_p8)
}
  0x3c   : > { %610 = dma.hbm_to_vmem [thread:$0]  (!%p902_p10), %s900_s8, 32, %s135_s18, %s124_s20  }
  0x3d   : > { %p998_p11 = scmp.ne.s32.totalorder %s993_s17, 0 }
  0x3e   : > { %s923_s6 = sand.u32 (!%p998_p11), 1, %s782_s10   ;;  %p999_p1 = scmp.ne.s32.totalorder (!%p998_p11), %s991_s15, 0 }
  0x3f   : > { %143 = sbr.rel (%p998_p11) target bundleno = 835 (0x343), region = 28  ;;  %s553_s7 = sshll.u32 (!%p998_p11), %s923_s6, 1 }
  0x40   : > { %s146_s14 = scalar_lea.sflag (!%p998_p11), [#allocation3], %s923_s6  ;;  %s149_s22 = scalar_lea.vmem (!%p998_p11), [#allocation2], %s553_s7 }
  0x44   : > { %765 = dma.done.wait (%p999_p1), %s146_s14, 32  }
  0x45   : > { %767 = vsyncadd (%p999_p1), %s146_s14, 4294967264  ;;  %p1000_p4 = scmp.eq.s32.totalorder %s838_s13, 0 }
  0x47   : > { %769 = dma.done.wait (%p1000_p4), [#allocation6], 256   ;;  %p1001_p6 = pmov %p1000_p4 }
  0x48   : > { %v796_v0 = vmov 10   ;;  %vm196_vm0 = vcmask 1041408   ;;  %v174_v1 = vld [vmem:[#allocation5] sm:$0xff]  ;;  %v173_v2 = vld [vmem:[%s149_s22] sm:$0x3]  ;;  %s797_s17 = smov 116  }
  0x49   : > { %771 = vsyncadd (%p1001_p6), [#allocation6], 4294967040  ;;  %659 = vset.pattern.permute.xlu1 %v796_v0  ;;  %187 = vrot.lane.b32.xlu0 %v174_v1, %s797_s17  ;;  %v175_v3 = vld [vmem:[#allocation5 + $0x8] sm:$0x3]  ;;  %vm191_vm1 = vcmask 15360   ;;  %vm285_vm2 = vcmask 80896  }
  0x4a   : > { %576 = vmatprep.subr.msk.mxu0 %vm196_vm0, %v173_v2  ;;  %184 = vperm.xlu1 %659, %v175_v3   ;;  %v798_v6 = vmov 11   ;;  %v799_v15 = vmov 0.0   ;;  %vm800_vm3 = vmmov 0   ;;  %v176_v16 = vld [vmem:[#allocation5 + $0xa] sm:$0x1]  ;;  %s563_s15 = sshll.u32 %s838_s13, 4 }
  0x4b   : > { %577 = vmatpush3.msk.msra.mxu0 %vm196_vm0, %v173_v2  ;;  %585 = vmatprep.mubr.msk.f32.mxu1 %vm285_vm2, %v174_v1  ;;  %s172_s8 = scalar_lea.vmem [#allocation7], %s923_s6  ;;  %s948_s23 = scalar_lea.hbm %s986_s2, %s563_s15 }
  0x4c   : > { %660 = vset.pattern.permute.xlu0 %v798_v6  ;;  %588 = vmatprep.subr.mxu0 %v799_v15  ;;  %s470_s18 = sshll.u32 %s172_s8, 4  ;;  %s458_s24 = scalar_lea.sflag [#allocation4], %s923_s6  ;;  %s471_s18 = int_to_ptr.vmem [resolvable:$true] %s470_s18 }
  0x4d   : > { %189 = vrot.lane.b32.xlu0 %v175_v3, %s797_s17  ;;  %s722_s25 = scalar_lea.vmem %s471_s18, 16  ;;  %p1002_p3 = scmp.ne.s32.totalorder %s996_s30, 0 }
  0x4e   : > { %179 = vperm.xlu1 %659, %v174_v1   ;;  %p723_p8 = scmp.ne.s32.totalorder %s471_s18, %s722_s25  ;;  %s801_s26 = smov [#allocation7]  }
  0x4f   : > { %s726_s27 = sshll.u32 %s801_s26, 4  ;;  %s727_s27 = int_to_ptr.vmem [resolvable:$false] %s726_s27 }
  0x50   : > { %p724_p10 = pnand %p723_p8, %p1002_p3  ;;  %s728_s13 = scalar_lea.vmem %s727_s27, 32 }
  0x51   : > { %282 = vperm.xlu0 %660, %v175_v3   ;;  %p729_p12 = scmp.lt.s32.totalorder %s471_s18, %s727_s27  ;;  %p730_p2 = scmp.lt.s32.totalorder %s728_s13, %s722_s25 }
  0x52   : > { %661 = vset.pattern.permute.xlu1 %v798_v6  ;;  %p725_p7 = pneg %p724_p10 }
  0x53   : > { %278 = vperm.xlu1 %661, %v174_v1   ;;  %p731_p13 = por %p730_p2, %p729_p12 }
  0x55   : > { %663 = vset.pattern.permute.xlu0 %v796_v0  ;;  %p732_p0 = pnand %p731_p13, %p725_p7 }
  0x57   : > { %662 = vset.pattern.permute.xlu1 %v796_v0 }
  0x58   : > { %372 = vperm.xlu1 %662, %v176_v16  }
  0xbb   : > { %v188_v4 = vpop.permute.xlu0 %187 }
  0xbc   : > { %578 = vmatprep.mubr.msk.f32.mxu0 %vm191_vm1, %v188_v4 }
  0xbf   : > { %v190_v5 = vpop.permute.xlu0 %189 }
  0xc0   : > { %579 = vmatmul.mubr.msk.f32.vlgmr.msra.gmra.mxu0 %vm191_vm1, %v190_v5 }
  0xc1   : > { %592 = vmatprep.mubr.msk.f32.mxu0 %vm800_vm3, %v799_v15 }
  0xc5   : > { %v185_v7 = vpop.permute.xlu1 %184 }
  0xc9   : > { %v180_v10 = vpop.permute.xlu1 %179 }
  0xcc   : > { %v283_v17 = vpop.permute.xlu0 %282 }
  0xce   : > { %v279_v19 = vpop.permute.xlu1 %278 }
  0xd3   : > { %v373_v25 = vpop.permute.xlu1 %372 }
 0x180   : > { %v580_v8 = vpop.f32.mrf.mxu0 }
 0x181   : > { %v272_v9 = vadd.f32 %v580_v8, %v185_v7 }
 0x182   : > { %v266_v11 = vpop.f32.mrf.mxu0 }
 0x183   : > { %v276_v12 = vmax.f32 %v272_v9, 0.0  ;;  %v267_v13 = vadd.f32 %v266_v11, %v180_v10 }
 0x185   : > { %v275_v14 = vmax.f32 %v267_v13, 0.0  ;;  %581 = vmatprep.subr.msk.mxu1 %vm196_vm0, %v276_v12 }
 0x186   : > { %582 = vmatpush3.msk.msra.mxu1 %vm196_vm0, %v276_v12 }
 0x187   : > { %583 = vmatprep.subr.mxu1 %v275_v14 }
 0x188   : > { %584 = vmatpush3.msra.mxu1 %v275_v14 }
 0x189   : > { %586 = vmatmul.mubr.msk.f32.vlgmr.msra.gmra.mxu1 %vm285_vm2, %v175_v3 }
 0x249   : > { %v587_v18 = vpop.f32.mrf.mxu1 }
 0x24a   : > { %v365_v20 = vadd.f32 %v587_v18, %v283_v17 }
 0x24b   : > { %v359_v21 = vpop.f32.mrf.mxu1 }
 0x24c   : > { %v369_v22 = vmax.f32 %v365_v20, 0.0  ;;  %v360_v23 = vadd.f32 %v359_v21, %v279_v19 }
 0x24e   : > { %v368_v24 = vmax.f32 %v360_v23, 0.0  ;;  %589 = vmatpush3.msk.msra.mxu0 %vm196_vm0, %v369_v22 }
 0x24f   : > { %590 = vmatprep.subr.mxu0 %v799_v15 }
 0x250   : > { %591 = vmatpush3.msra.mxu0 %v368_v24 }
 0x251   : > { %593 = vmatmul.mubr.msk.f32.vlgmr.msra.gmra.mxu0 %vm285_vm2, %v176_v16 }
 0x311   : > { %v446_v26 = vpop.f32.mrf.mxu0 }
 0x312   : > { %v447_v27 = vadd.f32 %v446_v26, %v373_v25 }
 0x313   : > { %v594_v28 = vpop.f32.mrf.mxu0 }
 0x314   : > { %v450_v29 = vsub.f32 0.0, %v447_v27 }
 0x316   : > { %v451_v30 = vmul.f32 1.442695, %v450_v29 }
 0x318   : > { %664 = vpow2.f32 %v451_v30 }
 0x325   : > { %v665_v31 = vpop.eup %664 }
 0x326   : > { %v453_v32 = vadd.f32 1.0, %v665_v31 }
 0x328   : > { %666 = vrcp.f32 %v453_v32 }
 0x335   : > { %v667_v33 = vpop.eup %666 }
 0x336   : > { %456 = vst [vmem:[%s172_s8] sm:$0x1] %v667_v33 }
 0x337   : > { %735 = shalt.err (!%p732_p0)
}
 0x338   : > { %s736_s28 = scalar_lea.hbm %s948_s23, 16  ;;  %s740_s5 = scalar_lea.hbm %s986_s2, 48 }
 0x339   : > { %p737_p5 = scmp.ne.s32.totalorder %s948_s23, %s736_s28  ;;  %p741_p1 = scmp.lt.s32.totalorder %s948_s23, %s986_s2 }
 0x33a   : > { %p742_p4 = scmp.lt.s32.totalorder %s740_s5, %s736_s28 }
 0x33b   : > { %p738_p9 = pnand %p737_p5, %p1002_p3 }
 0x33c   : > { %p743_p6 = por %p742_p4, %p741_p1 }
 0x33d   : > { %p739_p11 = pneg %p738_p9 }
 0x33f   : > { %p744_p8 = pnand %p743_p6, %p739_p11 }
 0x341   : > { %747 = shalt.err (!%p744_p8)
}
 0x342   : > { %601 = dma.vmem_to_hbm [thread:$0]  (%p1002_p3), %s471_s18, 16, %s948_s23, %s458_s24  }
 0x343 PF: > { %p618_p10 = scmp.ge.s32.totalorder %s790_s12, 2  ;;  %s482_s14 = sand.u32 1, %s778_s9  }
 0x344   : > { %p1003_p7 = scmp.ne.s32.totalorder %s992_s16, 0  ;;  %s483_s22 = scalar_lea.sflag [#allocation4], %s482_s14 }
 0x346   : > { %p612_p12 = pnand %p618_p10, %p1003_p7 }
 0x348   : > { %p613_p2 = pneg %p612_p12 }
 0x34a   : > { %773 = dma.done.wait (%p613_p2), %s483_s22, 16  }
 0x34b   : > { %775 = vsyncadd (%p613_p2), %s483_s22, 4294967280  ;;  %p16_p13 = scmp.ge.s32.totalorder %s870_s21, 5   ;;  %s1004_s9 = smov %s782_s10 }
 0x34c   : > { %s1005_s10 = smov %s786_s11  ;;  %s1006_s11 = smov %s887_s29 }
 0x34d   : > { %s1007_s12 = smov %s870_s21  ;;  %18 = sbr.rel (!%p16_p13) target bundleno = 6 (0x6), region = 77 }
 0x352   :  { %487 = vsyncpa [#allocation3], 1 }
 0x353   :  { %489 = vsyncpa [#allocation3 + $0x1], 1 }
 0x354   :  { %490 = vsyncpa [#allocation6], 1 }
 0x355   :  { %491 = vsyncpa [#allocation4], 1 }
 0x356   :  { %493 = vsyncpa [#allocation4 + $0x1], 1 }

</bundles_post_ra>
